<compile_context>
chip_gen: v6e
topology: v6e:2x2x1
jax: 0.10.0
libtpu: 0.0.40
codegen_flags: <defaults>
</compile_context>

<pallas_src>
import jax
import jax.numpy as jnp
import numpy as np
from jax import lax
from jax.experimental import pallas as pl
from jax.experimental.pallas import tpu as pltpu


def _round_up(x, m):
    return (x + m - 1) // m * m


def _choose_strip_rows(N, H, W, C, itemsize, vmem_budget_bytes=8 << 20,
                       target_steps=8):
    """Pick the output-strip height TH for the (N, ceil(H/TH)) grid.

    Grow TH while the double-buffered input/output blocks plus the im2col
    scratch fit a conservative VMEM budget (tightest on v7x), then shrink it
    so the grid has at least `target_steps` steps (pipeline depth + megacore).
    """
    Cout = 4 * C
    K = 9 * C + 1

    def vmem_bytes(th):
        # Minor two dims are padded to (8, 128) tiles; leading dims are untiled.
        inp = (th + 2) * _round_up(W + 2, 8) * _round_up(C, 128) * itemsize
        out = th * _round_up(W, 8) * _round_up(Cout, 128) * itemsize
        slab = th * _round_up(W, 8) * _round_up(K, 128) * itemsize
        return 2 * (inp + out) + slab          # x2: pipeline double-buffering

    th = 4
    while th + 4 <= max(4, H) and vmem_bytes(th + 4) <= vmem_budget_bytes:
        th += 4
    while th > 4 and N * pl.cdiv(H, th) < target_steps:
        th -= 4
    return th


def _conv3x3_im2col_kernel(x_ref, w_ref, o_ref, slab_ref):
    """3x3 conv of one (batch, H-strip) tile as a single im2col matmul.

    x_ref   : (1, 1, TH+2, W+2, Cin)   zero-padded input strip (1-row/col halo)
    w_ref   : (9*Cin + 1, Cout)        conv weights, bias appended as last row
    o_ref   : (1, 1, TH, W, Cout)      conv output strip
    slab_ref: (TH, W, 9*Cin + 1)       VMEM scratch for the im2col slab
    """
    TH = o_ref.shape[2]
    W = o_ref.shape[3]
    C = x_ref.shape[4]

    # Width (kx) taps: one aligned + two sublane-offset loads (instead of nine
    # shifted whole-patch slices).  Height (ky) shifts below are slices of the
    # untiled leading axis and cost nothing.  (The two offset loads could also
    # be expressed as pltpu.roll sublane rotations.)
    xs = [x_ref[0, 0, :, kx:kx + W, :] for kx in range(3)]     # 3 x (TH+2, W, C)

    # Stage the im2col slab in VMEM scratch: K rows ordered (ky, kx, cin) to
    # match the pre-reshaped weights, plus a ones column so the bias row of
    # w_ref comes out of the MXU for free (no separate bias pass).
    for ky in range(3):
        for kx in range(3):
            t = ky * 3 + kx
            slab_ref[:, :, t * C:(t + 1) * C] = xs[kx][ky:ky + TH]
    slab_ref[:, :, 9 * C:] = jnp.ones((TH, W, 1), dtype=slab_ref.dtype)

    # Single MXU contraction with K = 9*Cin + 1; accumulate in f32, cast once.
    acc = jnp.einsum("hwk,kc->hwc", slab_ref[...], w_ref[...],
                     preferred_element_type=jnp.float32)
    o_ref[0, 0] = acc.astype(o_ref.dtype)


@jax.jit
def pixelshuffle_block(x_nchw, weight_oihw, bias):
    """Conv2d(C -> 4C, 3x3, pad=1) + PixelShuffle(2).  NCHW in / NCHW out."""
    N, C, H, W = x_nchw.shape
    Cout = 4 * C
    TH = _choose_strip_rows(N, H, W, C, x_nchw.dtype.itemsize)
    S = pl.cdiv(H, TH)

    # ---- glue: layout, zero padding, halo strips (plain JAX) ----------------
    x_nhwc = jnp.transpose(x_nchw, (0, 2, 3, 1))                    # (N, H, W, C)
    pad_bottom = S * TH - H                                         # full last strip
    xp = jnp.pad(x_nhwc, ((0, 0), (1, 1 + pad_bottom), (1, 1), (0, 0)))
    # Materialize overlapping halo strips so each strip's halo rows come from
    # the real neighbouring rows (never zeroed at strip boundaries).
    # TODO(synk): replace this HBM copy (and the jnp.pad) with overlapping
    # element-indexed input windows / in-kernel halo DMA to cut input traffic.
    x_strips = jnp.stack(
        [lax.slice_in_dim(xp, s * TH, s * TH + TH + 2, axis=1) for s in range(S)],
        axis=1)                                                     # (N, S, TH+2, W+2, C)

    # Weights pre-reshaped to exactly what the kernel consumes: (9*Cin, Cout)
    # with the bias appended as one extra K row (single resident VMEM tile).
    w = jnp.transpose(weight_oihw, (2, 3, 1, 0)).reshape(9 * C, Cout)
    w_aug = jnp.concatenate([w, bias.reshape(1, Cout)], axis=0).astype(x_nchw.dtype)

    conv_strips = pl.pallas_call(
        _conv3x3_im2col_kernel,
        out_shape=jax.ShapeDtypeStruct((N, S, TH, W, Cout), x_nchw.dtype),
        grid=(N, S),
        in_specs=[
            pl.BlockSpec((1, 1, TH + 2, W + 2, C), lambda n, s: (n, s, 0, 0, 0)),
            pl.BlockSpec((9 * C + 1, Cout), lambda n, s: (0, 0)),
        ],
        out_specs=pl.BlockSpec((1, 1, TH, W, Cout), lambda n, s: (n, s, 0, 0, 0)),
        scratch_shapes=[pltpu.VMEM((TH, W, 9 * C + 1), x_nchw.dtype)],
        compiler_params=pltpu.CompilerParams(
            dimension_semantics=("parallel", "parallel")),
    )(x_strips, w_aug)

    # ---- glue: un-strip + PixelShuffle(2) (single transpose) ----------------
    conv = conv_strips.reshape(N, S * TH, W, Cout)[:, :H]           # (N, H, W, 4C)
    out = conv.reshape(N, H, W, C, 2, 2)                            # co = c*4 + i*2 + j
    out = jnp.transpose(out, (0, 3, 1, 4, 2, 5))                    # (N, C, H, 2, W, 2)
    return out.reshape(N, C, 2 * H, 2 * W)


def reference(x_nchw, weight_oihw, bias):
    """Pure-JAX reference matching the PyTorch module (NCHW conv + PixelShuffle)."""
    N, C, H, W = x_nchw.shape
    conv = lax.conv_general_dilated(
        x_nchw, weight_oihw, window_strides=(1, 1), padding=((1, 1), (1, 1)),
        dimension_numbers=("NCHW", "OIHW", "NCHW"))
    conv = conv + bias[None, :, None, None]
    out = conv.reshape(N, C, 2, 2, H, W)
    out = jnp.transpose(out, (0, 1, 4, 2, 5, 3))                    # (N, C, H, 2, W, 2)
    return out.reshape(N, C, 2 * H, 2 * W)


if __name__ == "__main__":
    key = jax.random.PRNGKey(0)
    k_x, k_w, k_b = jax.random.split(key, 3)

    N, C, H, W = 2, 4, 16, 16
    x = jax.random.normal(k_x, (N, C, H, W), dtype=jnp.float32)

    # Deterministic parameter init (Conv2d(C -> 4C, 3, padding=1) shapes).
    fan_in = C * 3 * 3
    bound = 1.0 / np.sqrt(fan_in)
    weight = jax.random.uniform(k_w, (4 * C, C, 3, 3), jnp.float32, -bound, bound)
    bias = jax.random.uniform(k_b, (4 * C,), jnp.float32, -bound, bound)

    out = jax.block_until_ready(pixelshuffle_block(x, weight, bias))
    ref = jax.block_until_ready(reference(x, weight, bias))

    assert out.shape == (N, C, 2 * H, 2 * W), out.shape
    np.testing.assert_allclose(np.asarray(out), np.asarray(ref), atol=1e-4, rtol=1e-4)
    print("KERNEL_OK")
</pallas_src>

<mosaic_0001>
module attributes {stable_mosaic.version = 11 : i64} {
  func.func @_conv3x3_im2col_kernel(%arg0: i32, %arg1: i32, %arg2: memref<1x1x6x18x4xf32, #tpu.memory_space<vmem>>, %arg3: memref<37x16xf32, #tpu.memory_space<vmem>>, %arg4: memref<1x1x4x16x16xf32, #tpu.memory_space<vmem>>, %arg5: memref<4x16x37xf32, #tpu.memory_space<vmem>>) attributes {dimension_semantics = [#tpu.dimension_semantics<parallel>, #tpu.dimension_semantics<parallel>], iteration_bounds = array<i64: 2, 4>, scalar_prefetch = 0 : i64, scratch_operands = 1 : i64, tpu.core_type = #tpu.core_type<tc>, window_params = [{transform_indices = @transform_0, window_bounds = array<i64: 1, 1, 6, 18, 4>}, {pipeline_mode = #tpu.pipeline_mode<synchronous>, transform_indices = @transform_1, window_bounds = array<i64: 37, 16>}, {transform_indices = @transform_2, window_bounds = array<i64: 1, 1, 4, 16, 16>}]} {
    %c0 = arith.constant 0 : index
    %c0_0 = arith.constant 0 : index
    %c0_1 = arith.constant 0 : index
    %c0_2 = arith.constant 0 : index
    %c0_3 = arith.constant 0 : index
    %0 = vector.load %arg2[%c0, %c0_0, %c0_1, %c0_2, %c0_3] : memref<1x1x6x18x4xf32, #tpu.memory_space<vmem>>, vector<1x1x6x16x4xf32>
    %1 = vector.shape_cast %0 : vector<1x1x6x16x4xf32> to vector<6x16x4xf32>
    %c0_4 = arith.constant 0 : index
    %c0_5 = arith.constant 0 : index
    %c0_6 = arith.constant 0 : index
    %c1 = arith.constant 1 : index
    %c0_7 = arith.constant 0 : index
    %2 = vector.load %arg2[%c0_4, %c0_5, %c0_6, %c1, %c0_7] : memref<1x1x6x18x4xf32, #tpu.memory_space<vmem>>, vector<1x1x6x16x4xf32>
    %3 = vector.shape_cast %2 : vector<1x1x6x16x4xf32> to vector<6x16x4xf32>
    %c0_8 = arith.constant 0 : index
    %c0_9 = arith.constant 0 : index
    %c0_10 = arith.constant 0 : index
    %c2 = arith.constant 2 : index
    %c0_11 = arith.constant 0 : index
    %4 = vector.load %arg2[%c0_8, %c0_9, %c0_10, %c2, %c0_11] : memref<1x1x6x18x4xf32, #tpu.memory_space<vmem>>, vector<1x1x6x16x4xf32>
    %5 = vector.shape_cast %4 : vector<1x1x6x16x4xf32> to vector<6x16x4xf32>
    %6 = vector.extract_strided_slice %1 {offsets = [0, 0, 0], sizes = [4, 16, 4], strides = [1, 1, 1]} : vector<6x16x4xf32> to vector<4x16x4xf32>
    %c0_12 = arith.constant 0 : index
    %c0_13 = arith.constant 0 : index
    %c0_14 = arith.constant 0 : index
    %7 = vector.load %arg5[%c0_12, %c0_13, %c0_14] : memref<4x16x37xf32, #tpu.memory_space<vmem>>, vector<4x16x4xf32>
    tpu.vector_store %arg5[%c0_12, %c0_13, %c0_14], %6 {strides = array<i32>} : memref<4x16x37xf32, #tpu.memory_space<vmem>>, vector<4x16x4xf32>,
    %8 = vector.extract_strided_slice %3 {offsets = [0, 0, 0], sizes = [4, 16, 4], strides = [1, 1, 1]} : vector<6x16x4xf32> to vector<4x16x4xf32>
    %c0_15 = arith.constant 0 : index
    %c0_16 = arith.constant 0 : index
    %c4 = arith.constant 4 : index
    %9 = vector.load %arg5[%c0_15, %c0_16, %c4] : memref<4x16x37xf32, #tpu.memory_space<vmem>>, vector<4x16x4xf32>
    tpu.vector_store %arg5[%c0_15, %c0_16, %c4], %8 {strides = array<i32>} : memref<4x16x37xf32, #tpu.memory_space<vmem>>, vector<4x16x4xf32>,
    %10 = vector.extract_strided_slice %5 {offsets = [0, 0, 0], sizes = [4, 16, 4], strides = [1, 1, 1]} : vector<6x16x4xf32> to vector<4x16x4xf32>
    %c0_17 = arith.constant 0 : index
    %c0_18 = arith.constant 0 : index
    %c8 = arith.constant 8 : index
    %11 = vector.load %arg5[%c0_17, %c0_18, %c8] : memref<4x16x37xf32, #tpu.memory_space<vmem>>, vector<4x16x4xf32>
    tpu.vector_store %arg5[%c0_17, %c0_18, %c8], %10 {strides = array<i32>} : memref<4x16x37xf32, #tpu.memory_space<vmem>>, vector<4x16x4xf32>,
    %12 = vector.extract_strided_slice %1 {offsets = [1, 0, 0], sizes = [4, 16, 4], strides = [1, 1, 1]} : vector<6x16x4xf32> to vector<4x16x4xf32>
    %c0_19 = arith.constant 0 : index
    %c0_20 = arith.constant 0 : index
    %c12 = arith.constant 12 : index
    %13 = vector.load %arg5[%c0_19, %c0_20, %c12] : memref<4x16x37xf32, #tpu.memory_space<vmem>>, vector<4x16x4xf32>
    tpu.vector_store %arg5[%c0_19, %c0_20, %c12], %12 {strides = array<i32>} : memref<4x16x37xf32, #tpu.memory_space<vmem>>, vector<4x16x4xf32>,
    %14 = vector.extract_strided_slice %3 {offsets = [1, 0, 0], sizes = [4, 16, 4], strides = [1, 1, 1]} : vector<6x16x4xf32> to vector<4x16x4xf32>
    %c0_21 = arith.constant 0 : index
    %c0_22 = arith.constant 0 : index
    %c16 = arith.constant 16 : index
    %15 = vector.load %arg5[%c0_21, %c0_22, %c16] : memref<4x16x37xf32, #tpu.memory_space<vmem>>, vector<4x16x4xf32>
    tpu.vector_store %arg5[%c0_21, %c0_22, %c16], %14 {strides = array<i32>} : memref<4x16x37xf32, #tpu.memory_space<vmem>>, vector<4x16x4xf32>,
    %16 = vector.extract_strided_slice %5 {offsets = [1, 0, 0], sizes = [4, 16, 4], strides = [1, 1, 1]} : vector<6x16x4xf32> to vector<4x16x4xf32>
    %c0_23 = arith.constant 0 : index
    %c0_24 = arith.constant 0 : index
    %c20 = arith.constant 20 : index
    %17 = vector.load %arg5[%c0_23, %c0_24, %c20] : memref<4x16x37xf32, #tpu.memory_space<vmem>>, vector<4x16x4xf32>
    tpu.vector_store %arg5[%c0_23, %c0_24, %c20], %16 {strides = array<i32>} : memref<4x16x37xf32, #tpu.memory_space<vmem>>, vector<4x16x4xf32>,
    %18 = vector.extract_strided_slice %1 {offsets = [2, 0, 0], sizes = [4, 16, 4], strides = [1, 1, 1]} : vector<6x16x4xf32> to vector<4x16x4xf32>
    %c0_25 = arith.constant 0 : index
    %c0_26 = arith.constant 0 : index
    %c24 = arith.constant 24 : index
    %19 = vector.load %arg5[%c0_25, %c0_26, %c24] : memref<4x16x37xf32, #tpu.memory_space<vmem>>, vector<4x16x4xf32>
    tpu.vector_store %arg5[%c0_25, %c0_26, %c24], %18 {strides = array<i32>} : memref<4x16x37xf32, #tpu.memory_space<vmem>>, vector<4x16x4xf32>,
    %20 = vector.extract_strided_slice %3 {offsets = [2, 0, 0], sizes = [4, 16, 4], strides = [1, 1, 1]} : vector<6x16x4xf32> to vector<4x16x4xf32>
    %c0_27 = arith.constant 0 : index
    %c0_28 = arith.constant 0 : index
    %c28 = arith.constant 28 : index
    %21 = vector.load %arg5[%c0_27, %c0_28, %c28] : memref<4x16x37xf32, #tpu.memory_space<vmem>>, vector<4x16x4xf32>
    tpu.vector_store %arg5[%c0_27, %c0_28, %c28], %20 {strides = array<i32>} : memref<4x16x37xf32, #tpu.memory_space<vmem>>, vector<4x16x4xf32>,
    %22 = vector.extract_strided_slice %5 {offsets = [2, 0, 0], sizes = [4, 16, 4], strides = [1, 1, 1]} : vector<6x16x4xf32> to vector<4x16x4xf32>
    %c0_29 = arith.constant 0 : index
    %c0_30 = arith.constant 0 : index
    %c32 = arith.constant 32 : index
    %23 = vector.load %arg5[%c0_29, %c0_30, %c32] : memref<4x16x37xf32, #tpu.memory_space<vmem>>, vector<4x16x4xf32>
    tpu.vector_store %arg5[%c0_29, %c0_30, %c32], %22 {strides = array<i32>} : memref<4x16x37xf32, #tpu.memory_space<vmem>>, vector<4x16x4xf32>,
    %cst = arith.constant 1.000000e+00 : f32
    %24 = vector.broadcast %cst : f32 to vector<4x16x1xf32>
    %c0_31 = arith.constant 0 : index
    %c0_32 = arith.constant 0 : index
    %c36 = arith.constant 36 : index
    %25 = vector.load %arg5[%c0_31, %c0_32, %c36] : memref<4x16x37xf32, #tpu.memory_space<vmem>>, vector<4x16x1xf32>
    tpu.vector_store %arg5[%c0_31, %c0_32, %c36], %24 {strides = array<i32>} : memref<4x16x37xf32, #tpu.memory_space<vmem>>, vector<4x16x1xf32>,
    %c0_33 = arith.constant 0 : index
    %c0_34 = arith.constant 0 : index
    %c0_35 = arith.constant 0 : index
    %26 = vector.load %arg5[%c0_33, %c0_34, %c0_35] : memref<4x16x37xf32, #tpu.memory_space<vmem>>, vector<4x16x37xf32>
    %c0_36 = arith.constant 0 : index
    %c0_37 = arith.constant 0 : index
    %27 = vector.load %arg3[%c0_36, %c0_37] : memref<37x16xf32, #tpu.memory_space<vmem>>, vector<37x16xf32>
    "tpu.trace_start"() <{level = 10 : i32, message = "hwk,kc->hwc"}> : () -> ()
    %cst_38 = arith.constant dense<0.000000e+00> : vector<4x16x16xf32>
    %28 = tpu.matmul %26, %27, %cst_38 {dimension_numbers = #tpu.dot_dimension_numbers<[2], [0], [0, 1], [1], [0, 0, 0, 1, 1, 1], [], []>} : vector<4x16x37xf32>, vector<37x16xf32>, vector<4x16x16xf32> -> vector<4x16x16xf32>
    "tpu.trace_stop"() : () -> ()
    %c0_39 = arith.constant 0 : index
    %c0_40 = arith.constant 0 : index
    %c0_41 = arith.constant 0 : index
    %c0_42 = arith.constant 0 : index
    %c0_43 = arith.constant 0 : index
    %29 = vector.load %arg4[%c0_39, %c0_40, %c0_41, %c0_42, %c0_43] : memref<1x1x4x16x16xf32, #tpu.memory_space<vmem>>, vector<1x1x4x16x16xf32>
    %30 = vector.shape_cast %29 : vector<1x1x4x16x16xf32> to vector<4x16x16xf32>
    %31 = vector.shape_cast %28 : vector<4x16x16xf32> to vector<1x1x4x16x16xf32>
    tpu.vector_store %arg4[%c0_39, %c0_40, %c0_41, %c0_42, %c0_43], %31 {strides = array<i32>} : memref<1x1x4x16x16xf32, #tpu.memory_space<vmem>>, vector<1x1x4x16x16xf32>,
    return
  }
  func.func @transform_0(%arg0: i32, %arg1: i32) -> (i32, i32, i32, i32, i32) {
    %c0_i32 = arith.constant 0 : i32
    %c0_i32_0 = arith.constant 0 : i32
    %c0_i32_1 = arith.constant 0 : i32
    %c0_i32_2 = arith.constant 0 : i32
    return %arg0, %arg1, %c0_i32, %c0_i32_0, %c0_i32_1 : i32, i32, i32, i32, i32
  }
  func.func @transform_1(%arg0: i32, %arg1: i32) -> (i32, i32) {
    %c0_i32 = arith.constant 0 : i32
    %c0_i32_0 = arith.constant 0 : i32
    %c0_i32_1 = arith.constant 0 : i32
    return %c0_i32, %c0_i32_0 : i32, i32
  }
  func.func @transform_2(%arg0: i32, %arg1: i32) -> (i32, i32, i32, i32, i32) {
    %c0_i32 = arith.constant 0 : i32
    %c0_i32_0 = arith.constant 0 : i32
    %c0_i32_1 = arith.constant 0 : i32
    %c0_i32_2 = arith.constant 0 : i32
    return %arg0, %arg1, %c0_i32, %c0_i32_0, %c0_i32_1 : i32, i32, i32, i32, i32
  }
}

</mosaic_0001>

<bundles_post_ra>
// kernel: pixelshuffle_block.1
= control target key start
LH: loop header
LB: loop body
LE: loop exit
PB: predicated region body
PF: predicated region fallthrough
CT: control target
= control target key end

     0   :  { %s963_s9 = smov 0   ;;  %s965_s10 = smov 0   ;;  %s1285_s0 = inlined_call_operand.vmem [shape: f32[2,4,6,18,4], index: 0, kind: input, shape index: {}]   ;;  %s1286_s1 = inlined_call_operand.vmem [shape: f32[37,16], index: 1, kind: input, shape index: {}]   ;;  %s1287_s2 = inlined_call_operand.vmem [shape: f32[2,4,4,16,16], index: 2, kind: output, shape index: {}]  }
   0x1   :  { %s967_s11 = smov 0   ;;  %s969_s12 = smov 0  }
   0x2   :  { %s971_s13 = smov 0  }
   0x3 LB: > { %s21_s14 = sadd.s32 1, %s929_s11  ;;  %s24_s15 = sadd.s32 1, %s933_s12  ;;  %s937_s13 = sphi %s971_s13, %s12_s13   ;;  %s933_s12 = sphi %s969_s12, %s1291_s12   ;;  %s929_s11 = sphi %s967_s11, %s1290_s11   ;;  %s925_s10 = sphi %s965_s10, %s1289_s10   ;;  %s921_s9 = sphi %s963_s9, %s1288_s9  }
   0x4   : > { %p22_p0 = scmp.ge.s32.totalorder %s21_s14, 4  ;;  %p787_p1 = scmp.ge.s32.totalorder %s937_s13, 1 }
   0x5   : > { %p132_p2 = scmp.lt.s32.totalorder %s937_s13, 9 }
   0x6   : > { %s1293_s14 = smov (%p22_p0, %s21_s14), 0  ;;  %s1295_s15 = smov (!%p22_p0, %s24_s15), %s933_s12 }
   0x7   : > { %p133_p3 = pnand %p787_p1, %p132_p2  ;;  %p26_p4 = scmp.ge.s32.totalorder %s1295_s15, 2 }
   0x8   : > { %p162_p5 = scmp.lt.s32.totalorder (!%p133_p3), %s925_s10, 1  ;;  %p164_p6 = scmp.lt.s32.totalorder (!%p133_p3), %s921_s9, 3 }
   0x9   : > { %s1297_s15 = smov (%p26_p4, %s1295_s15), 0  ;;  %136 = sbr.rel (%p133_p3) target bundleno = 467 (0x1d3), region = 28 }
   0xa   : > { %s939_s23 = smov (!%p133_p3), 4   ;;  %s940_s24 = smov (!%p133_p3), 8  }
   0xb   : > { %s941_s25 = smov (!%p133_p3), 12   ;;  %s942_s26 = smov (!%p133_p3), 16  }
   0xc   : > { %s943_s27 = smov (!%p133_p3), 20   ;;  %s944_s28 = smov (!%p133_p3), 24  }
   0xd   : > { %s945_s29 = smov (!%p133_p3), 28   ;;  %s946_s30 = smov (!%p133_p3), 32  }
   0xe   : > { %s1299_s10 = smov (!%p162_p5, %s925_s10), 1  ;;  %s1301_s9 = smov (!%p164_p6, %s921_s9), 3  ;;  %vm216_vm0 = vcmask 31744   ;;  %v544_v31 = vld [vmem:[%s1286_s1 + $0x20] sm:$0x1f]  ;;  %vm570_vm1 = vcmask 1044480  }
   0xf   : > { %s849_s16 = smul.u32 72, %s1299_s10  ;;  %v543_v32 = vld [vmem:[%s1286_s1 + $0x18] sm:$0xff]  ;;  %816 = vmatprep.subr.msk.mxu0 %vm570_vm1, %v544_v31  ;;  %838 = vmatprep.subr.msk.mxu1 %vm570_vm1, %v544_v31  ;;  %v542_v34 = vld [vmem:[%s1286_s1 + $0x10] sm:$0xff]  ;;  %v541_v36 = vld [vmem:[%s1286_s1 + $0x8] sm:$0xff]  ;;  %vm257_vm2 = vcmask 64544   ;;  %vm298_vm3 = vcmask 97344  }
  0x10   : > { %s848_s17 = smul.u32 18, %s1301_s9  ;;  %817 = vmatpush3.msk.msra.mxu0 %vm570_vm1, %v544_v31  ;;  %843 = vmatpush3.msk.msra.mxu1 %vm570_vm1, %v544_v31  ;;  %v540_v37 = vld [vmem:[%s1286_s1] sm:$0xff]  ;;  %vm339_vm4 = vcmask 130144   ;;  %vm374_vm5 = vcmask 162944   ;;  %vm409_vm6 = vcmask 195744   ;;  %vm444_vm7 = vcmask 228544  }
  0x11   : > { %818 = vmatprep.subr.mxu0 %v543_v32  ;;  %839 = vmatprep.subr.mxu1 %v543_v32  ;;  %vm479_vm8 = vcmask 261344   ;;  %vm514_vm9 = vcmask 294144   ;;  %vm523_vm10 = vcmask 302368   ;;  %vm545_vm11 = vcmask 302080   ;;  %s789_s20 = sshll.u32 %s1301_s9, 3  ;;  %s790_s21 = sshll.u32 %s1299_s10, 5 }
  0x12   : > { %s168_s18 = sadd.s32 %s849_s16, %s848_s17  ;;  %819 = vmatpush3.msra.mxu0 %v543_v32  ;;  %844 = vmatpush3.msra.mxu1 %v543_v32  ;;  %vm679_vm12 = vcmask 130048  }
  0x13   : > { %s788_s19 = sshll.u32 %s168_s18, 3  ;;  %820 = vmatprep.subr.mxu0 %v542_v34  ;;  %840 = vmatprep.subr.mxu1 %v542_v34 }
  0x14   : > { %s1002_s22 = scalar_lea.vmem %s1285_s0, %s788_s19  ;;  %821 = vmatpush3.msra.mxu0 %v542_v34  ;;  %845 = vmatpush3.msra.mxu1 %v542_v34 }
  0x15   : > { %v193_v0 = vld [vmem:[%s1002_s22 + $0x9] sm:$0xff]  ;;  %v192_v1 = vld [vmem:[%s1002_s22 + $0x1] sm:$0xff]  ;;  %v1009_v2 = vld [vmem:[%s1002_s22 + $0x39] sm:$0xff]  ;;  %822 = vmatprep.subr.mxu0 %v541_v36  ;;  %841 = vmatprep.subr.mxu1 %v541_v36 }
  0x16   : > { %235 = vrot.lane.b32.xlu1 %v193_v0, %s939_s23  ;;  %233 = vrot.lane.b32.xlu0 %v192_v1, %s939_s23  ;;  %v1012_v3 = vld [vmem:[%s1002_s22 + $0x31] sm:$0xff]  ;;  %v1015_v4 = vld [vmem:[%s1002_s22 + $0x48] sm:$0xff] }
  0x17   : > { %v182_v5 = vld [vmem:[%s1002_s22 + $0x18] sm:$0xff]  ;;  %v1019_v6 = vld [vmem:[%s1002_s22 + $0x50] sm:$0xff]  ;;  %223 = vst.msk [vmem:[#allocation2 + $0x30] sm:$0xff] %vm216_vm0, %v1015_v4  ;;  %v183_v7 = vld [vmem:[%s1002_s22 + $0x20] sm:$0xff]  ;;  %823 = vmatpush3.msra.mxu0 %v541_v36  ;;  %846 = vmatpush3.msra.mxu1 %v541_v36 }
  0x18   : > { %219 = vst.msk [vmem:[#allocation2 + $0x10] sm:$0xff] %vm216_vm0, %v182_v5  ;;  %224 = vst.msk [vmem:[#allocation2 + $0x38] sm:$0xff] %vm216_vm0, %v1019_v6  ;;  %v1033_v8 = vld [vmem:[%s1002_s22 + $0x32] sm:$0xff]  ;;  %v204_v9 = vld [vmem:[%s1002_s22 + $0x2] sm:$0xff]  ;;  %824 = vmatprep.subr.mxu0 %v540_v37  ;;  %842 = vmatprep.subr.mxu1 %v540_v37 }
  0x19   : > { %220 = vst.msk [vmem:[#allocation2 + $0x18] sm:$0xff] %vm216_vm0, %v183_v7  ;;  %v184_v10 = vld [vmem:[%s1002_s22 + $0x30] sm:$0xff]  ;;  %v185_v11 = vld [vmem:[%s1002_s22 + $0x38] sm:$0xff]  ;;  %v181_v14 = vld [vmem:[%s1002_s22 + $0x8] sm:$0xff]  ;;  %825 = vmatpush3.msra.mxu0 %v540_v37  ;;  %847 = vmatpush3.msra.mxu1 %v540_v37 }
  0x1a   : > { %243 = vrot.lane.b32.xlu1 %v1009_v2, %s939_s23  ;;  %241 = vrot.lane.b32.xlu0 %v1012_v3, %s939_s23  ;;  %221 = vst.msk [vmem:[#allocation2 + $0x20] sm:$0xff] %vm216_vm0, %v184_v10  ;;  %222 = vst.msk [vmem:[#allocation2 + $0x28] sm:$0xff] %vm216_vm0, %v185_v11  ;;  %v1044_v12 = vld [vmem:[%s1002_s22 + $0x3a] sm:$0xff]  ;;  %v205_v13 = vld [vmem:[%s1002_s22 + $0xa] sm:$0xff] }
  0x1b   : > { %v180_v15 = vld [vmem:[%s1002_s22] sm:$0xff]  ;;  %218 = vst.msk [vmem:[#allocation2 + $0x8] sm:$0xff] %vm216_vm0, %v181_v14  ;;  %v1061_v16 = vld [vmem:[%s1002_s22 + $0x49] sm:$0xff]  ;;  %v1071_v18 = vld [vmem:[%s1002_s22 + $0x51] sm:$0xff] }
  0x1c   : > { %217 = vst.msk [vmem:[#allocation2] sm:$0xff] %vm216_vm0, %v180_v15  ;;  %v194_v17 = vld [vmem:[%s1002_s22 + $0x19] sm:$0xff]  ;;  %v195_v19 = vld [vmem:[%s1002_s22 + $0x21] sm:$0xff]  ;;  %v1078_v20 = vld [vmem:[%s1002_s22 + $0x4a] sm:$0xff] }
  0x1d   : > { %v206_v21 = vld [vmem:[%s1002_s22 + $0x1a] sm:$0xff]  ;;  %v1091_v22 = vld [vmem:[%s1002_s22 + $0x52] sm:$0xff]  ;;  %v207_v23 = vld [vmem:[%s1002_s22 + $0x22] sm:$0xff] }
  0x1e   : > { %282 = vrot.lane.b32.xlu1 %v1033_v8, %s940_s24  ;;  %274 = vrot.lane.b32.xlu0 %v204_v9, %s940_s24  ;;  %v188_v24 = vld [vmem:[%s1002_s22 + $0x60] sm:$0xff]  ;;  %v189_v25 = vld [vmem:[%s1002_s22 + $0x68] sm:$0xff] }
  0x1f   : > { %v200_v26 = vld [vmem:[%s1002_s22 + $0x61] sm:$0xff]  ;;  %v201_v27 = vld [vmem:[%s1002_s22 + $0x69] sm:$0xff]  ;;  %v190_v30 = vld [vmem:[%s1002_s22 + $0x78] sm:$0xff] }
  0x20   : > { %v212_v28 = vld [vmem:[%s1002_s22 + $0x62] sm:$0xff]  ;;  %v213_v29 = vld [vmem:[%s1002_s22 + $0x6a] sm:$0xff]  ;;  %v202_v35 = vld [vmem:[%s1002_s22 + $0x79] sm:$0xff] }
  0x21   : > { %v191_v33 = vld [vmem:[%s1002_s22 + $0x80] sm:$0xff] }
  0x22   : > { %284 = vrot.lane.b32.xlu1 %v1044_v12, %s940_s24  ;;  %276 = vrot.lane.b32.xlu0 %v205_v13, %s940_s24  ;;  %v203_v38 = vld [vmem:[%s1002_s22 + $0x81] sm:$0xff] }
  0x23   : > { %v214_v41 = vld [vmem:[%s1002_s22 + $0x7a] sm:$0xff]  ;;  %v215_v44 = vld [vmem:[%s1002_s22 + $0x82] sm:$0xff]  ;;  %s177_s22 = sadd.s32 %s790_s21, %s789_s20 }
  0x26   : > { %323 = vrot.lane.b32.xlu1 %v1015_v4, %s941_s25  ;;  %315 = vrot.lane.b32.xlu0 %v182_v5, %s941_s25 }
  0x2a   : > { %325 = vrot.lane.b32.xlu1 %v1019_v6, %s941_s25  ;;  %317 = vrot.lane.b32.xlu0 %v183_v7, %s941_s25 }
  0x2e   : > { %358 = vrot.lane.b32.xlu1 %v1061_v16, %s942_s26  ;;  %350 = vrot.lane.b32.xlu0 %v194_v17, %s942_s26 }
  0x32   : > { %245 = vrot.lane.b32.xlu1 %v1061_v16, %s939_s23  ;;  %237 = vrot.lane.b32.xlu0 %v194_v17, %s939_s23 }
  0x36   : > { %360 = vrot.lane.b32.xlu1 %v1071_v18, %s942_s26  ;;  %352 = vrot.lane.b32.xlu0 %v195_v19, %s942_s26 }
  0x3a   : > { %393 = vrot.lane.b32.xlu1 %v1078_v20, %s943_s27  ;;  %385 = vrot.lane.b32.xlu0 %v206_v21, %s943_s27 }
  0x3e   : > { %247 = vrot.lane.b32.xlu1 %v1071_v18, %s939_s23  ;;  %239 = vrot.lane.b32.xlu0 %v195_v19, %s939_s23  ;;  %s791_s23 = sshll.u32 %s177_s22, 3 }
  0x42   : > { %286 = vrot.lane.b32.xlu1 %v1078_v20, %s940_s24  ;;  %278 = vrot.lane.b32.xlu0 %v206_v21, %s940_s24  ;;  %v947_v21 = vmov 1.0  }
  0x46   : > { %395 = vrot.lane.b32.xlu1 %v1091_v22, %s943_s27  ;;  %387 = vrot.lane.b32.xlu0 %v207_v23, %s943_s27 }
  0x4a   : > { %428 = vrot.lane.b32.xlu1 %v188_v24, %s944_s28  ;;  %420 = vrot.lane.b32.xlu0 %v184_v10, %s944_s28 }
  0x4e   : > { %288 = vrot.lane.b32.xlu1 %v1091_v22, %s940_s24  ;;  %280 = vrot.lane.b32.xlu0 %v207_v23, %s940_s24 }
  0x52   : > { %327 = vrot.lane.b32.xlu1 %v188_v24, %s941_s25  ;;  %319 = vrot.lane.b32.xlu0 %v184_v10, %s941_s25 }
  0x56   : > { %430 = vrot.lane.b32.xlu1 %v189_v25, %s944_s28  ;;  %422 = vrot.lane.b32.xlu0 %v185_v11, %s944_s28 }
  0x5a   : > { %463 = vrot.lane.b32.xlu1 %v200_v26, %s945_s29  ;;  %455 = vrot.lane.b32.xlu0 %v1012_v3, %s945_s29 }
  0x5e   : > { %329 = vrot.lane.b32.xlu1 %v189_v25, %s941_s25  ;;  %321 = vrot.lane.b32.xlu0 %v185_v11, %s941_s25 }
  0x62   : > { %362 = vrot.lane.b32.xlu1 %v200_v26, %s942_s26  ;;  %354 = vrot.lane.b32.xlu0 %v1012_v3, %s942_s26 }
  0x66   : > { %465 = vrot.lane.b32.xlu1 %v201_v27, %s945_s29  ;;  %457 = vrot.lane.b32.xlu0 %v1009_v2, %s945_s29 }
  0x6a   : > { %498 = vrot.lane.b32.xlu1 %v212_v28, %s946_s30  ;;  %490 = vrot.lane.b32.xlu0 %v1033_v8, %s946_s30 }
  0x6e   : > { %364 = vrot.lane.b32.xlu1 %v201_v27, %s942_s26  ;;  %356 = vrot.lane.b32.xlu0 %v1009_v2, %s942_s26  ;;  %s179_s26 = scalar_lea.vmem %s1287_s2, %s791_s23 }
  0x72   : > { %397 = vrot.lane.b32.xlu1 %v212_v28, %s943_s27  ;;  %389 = vrot.lane.b32.xlu0 %v1033_v8, %s943_s27 }
  0x76   : > { %500 = vrot.lane.b32.xlu1 %v213_v29, %s946_s30  ;;  %492 = vrot.lane.b32.xlu0 %v1044_v12, %s946_s30 }
  0x7a   : > { %399 = vrot.lane.b32.xlu1 %v213_v29, %s943_s27  ;;  %391 = vrot.lane.b32.xlu0 %v1044_v12, %s943_s27 }
  0x7e   : > { %432 = vrot.lane.b32.xlu1 %v190_v30, %s944_s28  ;;  %424 = vrot.lane.b32.xlu0 %v1015_v4, %s944_s28 }
  0x82   : > { %434 = vrot.lane.b32.xlu1 %v191_v33, %s944_s28  ;;  %426 = vrot.lane.b32.xlu0 %v1019_v6, %s944_s28 }
  0x86   : > { %467 = vrot.lane.b32.xlu1 %v202_v35, %s945_s29  ;;  %459 = vrot.lane.b32.xlu0 %v1061_v16, %s945_s29 }
  0x88   : > { %v236_v39 = vpop.permute.xlu1 %235  ;;  %v234_v40 = vpop.permute.xlu0 %233 }
  0x89   : > { %259 = vst.msk [vmem:[#allocation2 + $0x8] sm:$0xff] %vm257_vm2, %v236_v39  ;;  %258 = vst.msk [vmem:[#allocation2] sm:$0xff] %vm257_vm2, %v234_v40 }
  0x8a   : > { %469 = vrot.lane.b32.xlu1 %v203_v38, %s945_s29  ;;  %461 = vrot.lane.b32.xlu0 %v1071_v18, %s945_s29 }
  0x8c   : > { %v244_v42 = vpop.permute.xlu1 %243  ;;  %v242_v43 = vpop.permute.xlu0 %241 }
  0x8d   : > { %263 = vst.msk [vmem:[#allocation2 + $0x28] sm:$0xff] %vm257_vm2, %v244_v42  ;;  %262 = vst.msk [vmem:[#allocation2 + $0x20] sm:$0xff] %vm257_vm2, %v242_v43 }
  0x8e   : > { %502 = vrot.lane.b32.xlu1 %v214_v41, %s946_s30  ;;  %494 = vrot.lane.b32.xlu0 %v1078_v20, %s946_s30 }
  0x90   : > { %v283_v45 = vpop.permute.xlu1 %282  ;;  %v275_v46 = vpop.permute.xlu0 %274 }
  0x91   : > { %303 = vst.msk [vmem:[#allocation2 + $0x20] sm:$0xff] %vm298_vm3, %v283_v45  ;;  %299 = vst.msk [vmem:[#allocation2] sm:$0xff] %vm298_vm3, %v275_v46 }
  0x92   : > { %504 = vrot.lane.b32.xlu1 %v215_v44, %s946_s30  ;;  %496 = vrot.lane.b32.xlu0 %v1091_v22, %s946_s30 }
  0x94   : > { %v285_v47 = vpop.permute.xlu1 %284  ;;  %v277_v48 = vpop.permute.xlu0 %276 }
  0x95   : > { %304 = vst.msk [vmem:[#allocation2 + $0x28] sm:$0xff] %vm298_vm3, %v285_v47  ;;  %300 = vst.msk [vmem:[#allocation2 + $0x8] sm:$0xff] %vm298_vm3, %v277_v48 }
  0x98   : > { %v324_v49 = vpop.permute.xlu1 %323  ;;  %v316_v50 = vpop.permute.xlu0 %315 }
  0x99   : > { %344 = vst.msk [vmem:[#allocation2 + $0x20] sm:$0xff] %vm339_vm4, %v324_v49  ;;  %340 = vst.msk [vmem:[#allocation2] sm:$0xff] %vm339_vm4, %v316_v50 }
  0x9c   : > { %v326_v51 = vpop.permute.xlu1 %325  ;;  %v318_v52 = vpop.permute.xlu0 %317 }
  0x9d   : > { %345 = vst.msk [vmem:[#allocation2 + $0x28] sm:$0xff] %vm339_vm4, %v326_v51  ;;  %341 = vst.msk [vmem:[#allocation2 + $0x8] sm:$0xff] %vm339_vm4, %v318_v52 }
  0xa0   : > { %v359_v53 = vpop.permute.xlu1 %358  ;;  %v351_v54 = vpop.permute.xlu0 %350 }
  0xa1   : > { %379 = vst.msk [vmem:[#allocation2 + $0x20] sm:$0xff] %vm374_vm5, %v359_v53  ;;  %375 = vst.msk [vmem:[#allocation2] sm:$0xff] %vm374_vm5, %v351_v54 }
  0xa4   : > { %v246_v55 = vpop.permute.xlu1 %245  ;;  %v238_v56 = vpop.permute.xlu0 %237 }
  0xa5   : > { %264 = vst.msk [vmem:[#allocation2 + $0x30] sm:$0xff] %vm257_vm2, %v246_v55  ;;  %260 = vst.msk [vmem:[#allocation2 + $0x10] sm:$0xff] %vm257_vm2, %v238_v56 }
  0xa8   : > { %v361_v57 = vpop.permute.xlu1 %360  ;;  %v353_v58 = vpop.permute.xlu0 %352 }
  0xa9   : > { %380 = vst.msk [vmem:[#allocation2 + $0x28] sm:$0xff] %vm374_vm5, %v361_v57  ;;  %376 = vst.msk [vmem:[#allocation2 + $0x8] sm:$0xff] %vm374_vm5, %v353_v58 }
  0xac   : > { %v394_v59 = vpop.permute.xlu1 %393  ;;  %v386_v60 = vpop.permute.xlu0 %385 }
  0xad   : > { %414 = vst.msk [vmem:[#allocation2 + $0x20] sm:$0xff] %vm409_vm6, %v394_v59  ;;  %410 = vst.msk [vmem:[#allocation2] sm:$0xff] %vm409_vm6, %v386_v60 }
  0xb0   : > { %v248_v61 = vpop.permute.xlu1 %247  ;;  %v240_v62 = vpop.permute.xlu0 %239 }
  0xb1   : > { %265 = vst.msk [vmem:[#allocation2 + $0x38] sm:$0xff] %vm257_vm2, %v248_v61  ;;  %261 = vst.msk [vmem:[#allocation2 + $0x18] sm:$0xff] %vm257_vm2, %v240_v62 }
  0xb4   : > { %v287_v63 = vpop.permute.xlu1 %286  ;;  %v279_v0 = vpop.permute.xlu0 %278 }
  0xb5   : > { %305 = vst.msk [vmem:[#allocation2 + $0x30] sm:$0xff] %vm298_vm3, %v287_v63  ;;  %301 = vst.msk [vmem:[#allocation2 + $0x10] sm:$0xff] %vm298_vm3, %v279_v0 }
  0xb8   : > { %v396_v1 = vpop.permute.xlu1 %395  ;;  %v388_v2 = vpop.permute.xlu0 %387 }
  0xb9   : > { %415 = vst.msk [vmem:[#allocation2 + $0x28] sm:$0xff] %vm409_vm6, %v396_v1  ;;  %411 = vst.msk [vmem:[#allocation2 + $0x8] sm:$0xff] %vm409_vm6, %v388_v2 }
  0xbc   : > { %v429_v3 = vpop.permute.xlu1 %428  ;;  %v421_v4 = vpop.permute.xlu0 %420 }
  0xbd   : > { %449 = vst.msk [vmem:[#allocation2 + $0x20] sm:$0xff] %vm444_vm7, %v429_v3  ;;  %445 = vst.msk [vmem:[#allocation2] sm:$0xff] %vm444_vm7, %v421_v4 }
  0xc0   : > { %v289_v5 = vpop.permute.xlu1 %288  ;;  %v281_v6 = vpop.permute.xlu0 %280 }
  0xc1   : > { %306 = vst.msk [vmem:[#allocation2 + $0x38] sm:$0xff] %vm298_vm3, %v289_v5  ;;  %302 = vst.msk [vmem:[#allocation2 + $0x18] sm:$0xff] %vm298_vm3, %v281_v6 }
  0xc4   : > { %v328_v7 = vpop.permute.xlu1 %327  ;;  %v320_v8 = vpop.permute.xlu0 %319 }
  0xc5   : > { %346 = vst.msk [vmem:[#allocation2 + $0x30] sm:$0xff] %vm339_vm4, %v328_v7  ;;  %342 = vst.msk [vmem:[#allocation2 + $0x10] sm:$0xff] %vm339_vm4, %v320_v8 }
  0xc8   : > { %v431_v9 = vpop.permute.xlu1 %430  ;;  %v423_v10 = vpop.permute.xlu0 %422 }
  0xc9   : > { %450 = vst.msk [vmem:[#allocation2 + $0x28] sm:$0xff] %vm444_vm7, %v431_v9  ;;  %446 = vst.msk [vmem:[#allocation2 + $0x8] sm:$0xff] %vm444_vm7, %v423_v10 }
  0xcc   : > { %v464_v11 = vpop.permute.xlu1 %463  ;;  %v456_v12 = vpop.permute.xlu0 %455 }
  0xcd   : > { %484 = vst.msk [vmem:[#allocation2 + $0x20] sm:$0xff] %vm479_vm8, %v464_v11  ;;  %480 = vst.msk [vmem:[#allocation2] sm:$0xff] %vm479_vm8, %v456_v12 }
  0xd0   : > { %v330_v13 = vpop.permute.xlu1 %329  ;;  %v322_v14 = vpop.permute.xlu0 %321 }
  0xd1   : > { %347 = vst.msk [vmem:[#allocation2 + $0x38] sm:$0xff] %vm339_vm4, %v330_v13  ;;  %343 = vst.msk [vmem:[#allocation2 + $0x18] sm:$0xff] %vm339_vm4, %v322_v14 }
  0xd4   : > { %v363_v15 = vpop.permute.xlu1 %362  ;;  %v355_v16 = vpop.permute.xlu0 %354 }
  0xd5   : > { %381 = vst.msk [vmem:[#allocation2 + $0x30] sm:$0xff] %vm374_vm5, %v363_v15  ;;  %377 = vst.msk [vmem:[#allocation2 + $0x10] sm:$0xff] %vm374_vm5, %v355_v16 }
  0xd8   : > { %v466_v17 = vpop.permute.xlu1 %465  ;;  %v458_v18 = vpop.permute.xlu0 %457 }
  0xd9   : > { %485 = vst.msk [vmem:[#allocation2 + $0x28] sm:$0xff] %vm479_vm8, %v466_v17  ;;  %481 = vst.msk [vmem:[#allocation2 + $0x8] sm:$0xff] %vm479_vm8, %v458_v18 }
  0xdc   : > { %v499_v19 = vpop.permute.xlu1 %498  ;;  %v491_v20 = vpop.permute.xlu0 %490 }
  0xdd   : > { %519 = vst.msk [vmem:[#allocation2 + $0x20] sm:$0xff] %vm514_vm9, %v499_v19  ;;  %515 = vst.msk [vmem:[#allocation2] sm:$0xff] %vm514_vm9, %v491_v20 }
  0xde   : > { %528 = vst.msk [vmem:[#allocation2 + $0x20] sm:$0xff] %vm523_vm10, %v947_v21  ;;  %524 = vst.msk [vmem:[#allocation2] sm:$0xff] %vm523_vm10, %v947_v21 }
  0xe0   : > { %v365_v22 = vpop.permute.xlu1 %364  ;;  %v357_v23 = vpop.permute.xlu0 %356 }
  0xe1   : > { %382 = vst.msk [vmem:[#allocation2 + $0x38] sm:$0xff] %vm374_vm5, %v365_v22  ;;  %378 = vst.msk [vmem:[#allocation2 + $0x18] sm:$0xff] %vm374_vm5, %v357_v23 }
  0xe4   : > { %v398_v24 = vpop.permute.xlu1 %397  ;;  %v390_v25 = vpop.permute.xlu0 %389 }
  0xe5   : > { %416 = vst.msk [vmem:[#allocation2 + $0x30] sm:$0xff] %vm409_vm6, %v398_v24  ;;  %412 = vst.msk [vmem:[#allocation2 + $0x10] sm:$0xff] %vm409_vm6, %v390_v25  ;;  %v532_v26 = vld [vmem:[#allocation2] sm:$0xff] }
  0xe6   : > { %v536_v27 = vld [vmem:[#allocation2 + $0x20] sm:$0xff]  ;;  %826 = vmatprep.mubr.msk.f32.mxu0 %vm545_vm11, %v532_v26 }
  0xe7   : > { %832 = vmatprep.mubr.msk.f32.mxu1 %vm545_vm11, %v536_v27 }
  0xe8   : > { %v501_v28 = vpop.permute.xlu1 %500  ;;  %v493_v29 = vpop.permute.xlu0 %492 }
  0xe9   : > { %520 = vst.msk [vmem:[#allocation2 + $0x28] sm:$0xff] %vm514_vm9, %v501_v28  ;;  %516 = vst.msk [vmem:[#allocation2 + $0x8] sm:$0xff] %vm514_vm9, %v493_v29 }
  0xea   : > { %529 = vst.msk [vmem:[#allocation2 + $0x28] sm:$0xff] %vm523_vm10, %v947_v21  ;;  %525 = vst.msk [vmem:[#allocation2 + $0x8] sm:$0xff] %vm523_vm10, %v947_v21 }
  0xec   : > { %v400_v30 = vpop.permute.xlu1 %399  ;;  %v392_v31 = vpop.permute.xlu0 %391 }
  0xed   : > { %417 = vst.msk [vmem:[#allocation2 + $0x38] sm:$0xff] %vm409_vm6, %v400_v30  ;;  %413 = vst.msk [vmem:[#allocation2 + $0x18] sm:$0xff] %vm409_vm6, %v392_v31 }
  0xf0   : > { %v433_v32 = vpop.permute.xlu1 %432  ;;  %v425_v33 = vpop.permute.xlu0 %424 }
  0xf1   : > { %451 = vst.msk [vmem:[#allocation2 + $0x30] sm:$0xff] %vm444_vm7, %v433_v32  ;;  %447 = vst.msk [vmem:[#allocation2 + $0x10] sm:$0xff] %vm444_vm7, %v425_v33  ;;  %v533_v34 = vld [vmem:[#allocation2 + $0x8] sm:$0xff] }
  0xf2   : > { %v537_v35 = vld [vmem:[#allocation2 + $0x28] sm:$0xff]  ;;  %827 = vmatmul.mubr.msk.f32.vlgmr.msra.gmra.mxu0 %vm545_vm11, %v533_v34 }
  0xf3   : > { %833 = vmatmul.mubr.msk.f32.vlgmr.msra.gmra.mxu1 %vm545_vm11, %v537_v35 }
  0xf4   : > { %v435_v36 = vpop.permute.xlu1 %434  ;;  %v427_v37 = vpop.permute.xlu0 %426 }
  0xf5   : > { %452 = vst.msk [vmem:[#allocation2 + $0x38] sm:$0xff] %vm444_vm7, %v435_v36  ;;  %448 = vst.msk [vmem:[#allocation2 + $0x18] sm:$0xff] %vm444_vm7, %v427_v37 }
  0xf8   : > { %v468_v38 = vpop.permute.xlu1 %467  ;;  %v460_v39 = vpop.permute.xlu0 %459 }
  0xf9   : > { %486 = vst.msk [vmem:[#allocation2 + $0x30] sm:$0xff] %vm479_vm8, %v468_v38  ;;  %482 = vst.msk [vmem:[#allocation2 + $0x10] sm:$0xff] %vm479_vm8, %v460_v39 }
  0xfc   : > { %v470_v40 = vpop.permute.xlu1 %469  ;;  %v462_v41 = vpop.permute.xlu0 %461 }
  0xfd   : > { %487 = vst.msk [vmem:[#allocation2 + $0x38] sm:$0xff] %vm479_vm8, %v470_v40  ;;  %483 = vst.msk [vmem:[#allocation2 + $0x18] sm:$0xff] %vm479_vm8, %v462_v41 }
 0x100   : > { %v503_v42 = vpop.permute.xlu1 %502  ;;  %v495_v43 = vpop.permute.xlu0 %494 }
 0x101   : > { %521 = vst.msk [vmem:[#allocation2 + $0x30] sm:$0xff] %vm514_vm9, %v503_v42  ;;  %517 = vst.msk [vmem:[#allocation2 + $0x10] sm:$0xff] %vm514_vm9, %v495_v43 }
 0x102   : > { %530 = vst.msk [vmem:[#allocation2 + $0x30] sm:$0xff] %vm523_vm10, %v947_v21  ;;  %526 = vst.msk [vmem:[#allocation2 + $0x10] sm:$0xff] %vm523_vm10, %v947_v21 }
 0x104   : > { %v505_v44 = vpop.permute.xlu1 %504  ;;  %v497_v45 = vpop.permute.xlu0 %496 }
 0x105   : > { %522 = vst.msk [vmem:[#allocation2 + $0x38] sm:$0xff] %vm514_vm9, %v505_v44  ;;  %518 = vst.msk [vmem:[#allocation2 + $0x18] sm:$0xff] %vm514_vm9, %v497_v45 }
 0x106   : > { %531 = vst.msk [vmem:[#allocation2 + $0x38] sm:$0xff] %vm523_vm10, %v947_v21  ;;  %527 = vst.msk [vmem:[#allocation2 + $0x18] sm:$0xff] %vm523_vm10, %v947_v21 }
 0x109   : > { %v534_v46 = vld [vmem:[#allocation2 + $0x10] sm:$0xff] }
 0x10a   : > { %v538_v47 = vld [vmem:[#allocation2 + $0x30] sm:$0xff]  ;;  %829 = vmatprep.mubr.msk.f32.mxu0 %vm545_vm11, %v534_v46 }
 0x10b   : > { %835 = vmatprep.mubr.msk.f32.mxu1 %vm545_vm11, %v538_v47 }
 0x10d   : > { %v535_v48 = vld [vmem:[#allocation2 + $0x18] sm:$0xff] }
 0x10e   : > { %v539_v49 = vld [vmem:[#allocation2 + $0x38] sm:$0xff]  ;;  %830 = vmatmul.mubr.msk.f32.gmra.mxu0 %vm545_vm11, %v535_v48 }
 0x10f   : > { %836 = vmatmul.mubr.msk.f32.gmra.mxu1 %vm545_vm11, %v539_v49 }
 0x1b2   : > { %v828_v50 = vpop.f32.mrf.mxu0 }
 0x1b3   : > { %v834_v51 = vpop.f32.mrf.mxu1  ;;  %681 = vst.msk [vmem:[%s179_s26 + $0x8] sm:$0xff] %vm679_vm12, %v828_v50 }
 0x1b4   : > { %685 = vst.msk [vmem:[%s179_s26 + $0x28] sm:$0xff] %vm679_vm12, %v834_v51  ;;  %v640_v52 = vpop.f32.mrf.mxu0 }
 0x1b5   : > { %v660_v53 = vpop.f32.mrf.mxu1  ;;  %680 = vst.msk [vmem:[%s179_s26] sm:$0xff] %vm679_vm12, %v640_v52 }
 0x1b6   : > { %684 = vst.msk [vmem:[%s179_s26 + $0x20] sm:$0xff] %vm679_vm12, %v660_v53 }
 0x1ce   : > { %v831_v54 = vpop.f32.mrf.mxu0 }
 0x1cf   : > { %v837_v55 = vpop.f32.mrf.mxu1  ;;  %683 = vst.msk [vmem:[%s179_s26 + $0x18] sm:$0xff] %vm679_vm12, %v831_v54 }
 0x1d0   : > { %687 = vst.msk [vmem:[%s179_s26 + $0x38] sm:$0xff] %vm679_vm12, %v837_v55  ;;  %v650_v56 = vpop.f32.mrf.mxu0 }
 0x1d1   : > { %v670_v57 = vpop.f32.mrf.mxu1  ;;  %682 = vst.msk [vmem:[%s179_s26 + $0x10] sm:$0xff] %vm679_vm12, %v650_v56 }
 0x1d2   : > { %686 = vst.msk [vmem:[%s179_s26 + $0x30] sm:$0xff] %vm679_vm12, %v670_v57 }
 0x1d3 PF: > { %s12_s13 = sadd.s32 1, %s937_s13   ;;  %s1288_s9 = smov %s929_s11 }
 0x1d4   : > { %p9_p7 = scmp.ge.s32.totalorder %s12_s13, 10   ;;  %s1289_s10 = smov %s933_s12 }
 0x1d5   : > { %s1290_s11 = smov %s1293_s14  ;;  %s1291_s12 = smov %s1297_s15 }
 0x1d6   :  { %11 = sbr.rel (!%p9_p7) target bundleno = 3 (0x3), region = 58 }

</bundles_post_ra>
